<compile_context>
chip_gen: v7x
topology: tpu7x:2x2x1
jax: 0.10.0
libtpu: 0.0.40
codegen_flags: <defaults>
</compile_context>

<pallas_src>
import jax
import jax.numpy as jnp
from jax import lax
from jax.experimental import pallas as pl
from jax.experimental.pallas import tpu as pltpu


def _edge_mlp_kernel(src_ref, dst_ref, w1aT_ref, w1bT_ref, b1_ref, w2_ref,
                     b2_ref, out_ref):
    # Up-cast the bf16 edge rows on the VPU; MXU dots are f32 x f32 = f32
    # (bf16 x bf16 -> f32 dots are not supported by every execution backend).
    src = src_ref[...].astype(jnp.float32)             # (tile, D)
    dst = dst_ref[...].astype(jnp.float32)             # (tile, D)
    # cat([e_src, e_dst], 1) @ W1 == W1[:D].T @ e_src.T + W1[D:].T @ e_dst.T,
    # so no in-kernel concat.  Contract on D so the activation stays (H, tile)
    # with the edge axis on lanes.
    dn = (((1,), (1,)), ((), ()))
    h = (lax.dot_general(w1aT_ref[...], src, dn,
                         preferred_element_type=jnp.float32)
         + lax.dot_general(w1bT_ref[...], dst, dn,
                           preferred_element_type=jnp.float32)
         + b1_ref[...])                                 # (H, 1) broadcasts over lanes
    h = jnp.maximum(h, 0.0)                             # ReLU (VPU)
    # Linear(H, 1): VPU multiply + cross-sublane reduce -> lane-dense (1, tile)
    # logits, keeping the MXU for the D->H GEMMs.
    logits = jnp.sum(h * w2_ref[...], axis=0, keepdims=True) + b2_ref[0]
    out_ref[...] = logits.astype(out_ref.dtype)


def _choose_tile(E, D, H, *, max_tile=8192, vmem_budget_bytes=40 * 1024 * 1024):
    """Largest lane-aligned edge tile that fits a v7x-safe VMEM budget."""
    e_lanes = max(128, pl.cdiv(E, 128) * 128)
    # Rough per-edge-lane VMEM footprint (bytes):
    #   bf16 src/dst blocks, double-buffered     : 2 * 2 * 2*D = 8*D
    #   in-kernel f32 up-casts of both blocks    : 2 * 4*D     = 8*D
    #   ~2 f32 (H, tile) temporaries (acc, relu) : 2 * 4*H     = 8*H
    #   f32 output lane, double-buffered         :               8
    bytes_per_lane = 16 * D + 8 * H + 8
    budget_tile = max(128, (vmem_budget_bytes // bytes_per_lane) // 128 * 128)
    tile = min(max_tile, e_lanes, budget_tile)
    # Keep >= 2 grid steps for large edge sets so the "parallel" axis can
    # shard across both v7x TensorCores (1-TC chips are unaffected).
    if e_lanes >= 2048:
        tile = min(tile, max(128, (e_lanes // 2) // 128 * 128))
    return tile, bytes_per_lane


def edge_mlp_pallas(node_emb, src, dst, w1, b1, w2, b2, *, max_tile=8192):
    """logits[e] = Linear2(relu(Linear1(cat(node_emb[src[e]], node_emb[dst[e]])))).

    node_emb: (N, D) float32; src/dst: (E,) int32.  Returns (E, 1) float32.
    """
    N, D = node_emb.shape
    E = src.shape[0]
    two_d, H = w1.shape
    assert two_d == 2 * D

    if E == 0:
        return jnp.zeros((0, 1), jnp.float32)

    tile, bytes_per_lane = _choose_tile(E, D, H, max_tile=max_tile)
    num_tiles = pl.cdiv(E, tile)
    e_pad = num_tiles * tile

    # Pad only the (tiny) index vectors; padded edges gather node 0's row and
    # are sliced off at the end.  No data-side jnp.pad / transpose round trips.
    if e_pad != E:
        pad = e_pad - E
        src = jnp.concatenate([src, jnp.zeros((pad,), src.dtype)])
        dst = jnp.concatenate([dst, jnp.zeros((pad,), dst.dtype)])

    # Gather contiguous bf16 rows straight out of (N, D): halves the gathered
    # HBM traffic and keeps the gather a plain row gather (no relayout).
    # TODO(synk): for very large graphs, move this gather into the kernel
    # (node_emb via pl.ANY + scalar-prefetched edge_index + DMA gather) to
    # avoid materializing the per-edge rows in HBM at all.
    ne16 = node_emb.astype(jnp.bfloat16)
    src_rows = jnp.take(ne16, src, axis=0)                  # (e_pad, D) bf16
    dst_rows = jnp.take(ne16, dst, axis=0)                  # (e_pad, D) bf16

    # Split + transpose W1 (no in-kernel concat); weights stay f32 (tiny).
    w1aT = jnp.asarray(w1[:D, :].T, jnp.float32)            # (H, D)
    w1bT = jnp.asarray(w1[D:, :].T, jnp.float32)            # (H, D)
    b1_col = b1.reshape(H, 1).astype(jnp.float32)
    w2_col = w2.reshape(H, 1).astype(jnp.float32)
    b2_s = b2.reshape(1).astype(jnp.float32)                # scalar -> SMEM

    # VMEM limit derived from the chosen tile (v7x-safe; plenty on v5e/v6e).
    est = bytes_per_lane * tile + 4 * (2 * H * D + 4 * H) * 4
    vmem_limit = int(min(96 * 2**20, max(32 * 2**20, est * 1.3)))

    out = pl.pallas_call(
        _edge_mlp_kernel,
        out_shape=jax.ShapeDtypeStruct((1, e_pad), jnp.float32),
        grid_spec=pltpu.PrefetchScalarGridSpec(
            num_scalar_prefetch=0,
            grid=(num_tiles,),
            in_specs=[
                pl.BlockSpec((tile, D), lambda i: (i, 0)),   # src rows
                pl.BlockSpec((tile, D), lambda i: (i, 0)),   # dst rows
                # Grid-invariant weight blocks (constant index_map -> fetched
                # once across the grid).
                # TODO(synk): single-buffer these (pl.Buffered(1) / scratch
                # staging) at production D/H to reclaim VMEM for larger tiles.
                pl.BlockSpec((H, D), lambda i: (0, 0)),      # W1[:D].T
                pl.BlockSpec((H, D), lambda i: (0, 0)),      # W1[D:].T
                pl.BlockSpec((H, 1), lambda i: (0, 0)),      # b1 column
                pl.BlockSpec((H, 1), lambda i: (0, 0)),      # W2 column
                pl.BlockSpec(memory_space=pltpu.MemorySpace.SMEM),  # b2 scalar
            ],
            out_specs=pl.BlockSpec((1, tile), lambda i: (0, i)),
        ),
        compiler_params=pltpu.CompilerParams(
            dimension_semantics=("parallel",),     # edge axis shards across TCs
            vmem_limit_bytes=vmem_limit,
        ),
    )(src_rows, dst_rows, w1aT, w1bT, b1_col, w2_col, b2_s)

    # (1, e_pad) lane-dense slab -> (E, 1) column expected by the module API.
    return out.reshape(e_pad, 1)[:E]


def xavier_uniform(key, shape, dtype=jnp.float32):
    # torch.nn.init.xavier_uniform_; fan_in/fan_out symmetric for (in, out).
    fan_in, fan_out = shape[0], shape[1]
    limit = jnp.sqrt(6.0 / (fan_in + fan_out))
    return jax.random.uniform(key, shape, dtype, minval=-limit, maxval=limit)


def view_learner_forward(params, batch, x, edge_index, edge_attr):
    """Mirrors _ViewLearner.forward.  Encoder is a deterministic stand-in."""
    # TODO(synk): the real GNN encoder is an external module; a plain-JAX
    # linear+relu stand-in produces node_emb of width out_node_dim.
    del batch, edge_attr
    node_emb = jax.nn.relu(x @ params["enc_w"] + params["enc_b"])   # (N, D)
    src, dst = edge_index[0], edge_index[1]
    return edge_mlp_pallas(node_emb, src, dst,
                           params["w1"], params["b1"],
                           params["w2"], params["b2"])


def reference_forward_f32(params, batch, x, edge_index, edge_attr):
    del batch, edge_attr
    node_emb = jax.nn.relu(x @ params["enc_w"] + params["enc_b"])
    src, dst = edge_index[0], edge_index[1]
    edge_emb = jnp.concatenate([node_emb[src], node_emb[dst]], axis=1)
    h = jax.nn.relu(edge_emb @ params["w1"] + params["b1"])
    return h @ params["w2"].reshape(-1, 1) + params["b2"]


def reference_forward_bf16_rounded(params, batch, x, edge_index, edge_attr):
    # Same numerics as the kernel: node embeddings rounded through bf16, all
    # matmuls in f32.
    del batch, edge_attr
    node_emb = jax.nn.relu(x @ params["enc_w"] + params["enc_b"])
    ne = node_emb.astype(jnp.bfloat16).astype(jnp.float32)
    src, dst = edge_index[0], edge_index[1]
    edge_emb = jnp.concatenate([ne[src], ne[dst]], axis=1)
    h = jax.nn.relu(edge_emb @ params["w1"] + params["b1"])
    return h @ params["w2"].reshape(-1, 1) + params["b2"]


if __name__ == "__main__":
    key = jax.random.PRNGKey(0)
    k_enc_w, k_x, k_src, k_dst, k_w1, k_w2 = jax.random.split(key, 6)

    N = 16          # nodes
    F = 8           # raw node-feature dim
    D = 32          # encoder.out_node_dim
    H = 64          # mlp_edge_model_dim
    E = 32          # edges

    params = {
        "enc_w": xavier_uniform(k_enc_w, (F, D)),
        "enc_b": jnp.zeros((D,), jnp.float32),
        "w1": xavier_uniform(k_w1, (2 * D, H)),      # Linear(input_dim*2, H)
        "b1": jnp.zeros((H,), jnp.float32),          # bias filled with 0.0
        "w2": xavier_uniform(k_w2, (H, 1)),          # Linear(H, 1)
        "b2": jnp.zeros((1,), jnp.float32),
    }

    x = jax.random.normal(k_x, (N, F), jnp.float32)
    edge_index = jnp.stack([
        jax.random.randint(k_src, (E,), 0, N),
        jax.random.randint(k_dst, (E,), 0, N),
    ], axis=0).astype(jnp.int32)                     # (2, E)
    batch = jnp.zeros((N,), jnp.int32)               # single graph
    edge_attr = jnp.zeros((E, 4), jnp.float32)       # unused by stand-in encoder

    fwd = jax.jit(view_learner_forward)
    edge_logits = jax.block_until_ready(
        fwd(params, batch, x, edge_index, edge_attr))

    ref32 = reference_forward_f32(params, batch, x, edge_index, edge_attr)
    ref16 = reference_forward_bf16_rounded(params, batch, x, edge_index, edge_attr)

    assert edge_logits.shape == (E, 1)
    # bf16-rounded embeddings, f32 accumulation: loose check vs pure-f32
    # reference, tight check vs the rounding-matched reference.
    assert jnp.allclose(edge_logits, ref32, atol=2e-2, rtol=2e-2)
    assert jnp.allclose(edge_logits, ref16, atol=2e-3, rtol=2e-3)

    print("KERNEL_OK")
</pallas_src>

<mosaic_0001>
module attributes {stable_mosaic.version = 11 : i64} {
  func.func @_edge_mlp_kernel(%arg0: i32, %arg1: memref<128x32xbf16, #tpu.memory_space<vmem>>, %arg2: memref<128x32xbf16, #tpu.memory_space<vmem>>, %arg3: memref<64x32xf32, #tpu.memory_space<vmem>>, %arg4: memref<64x32xf32, #tpu.memory_space<vmem>>, %arg5: memref<64x1xf32, #tpu.memory_space<vmem>>, %arg6: memref<64x1xf32, #tpu.memory_space<vmem>>, %arg7: memref<1xf32, #tpu.memory_space<smem>>, %arg8: memref<1x128xf32, #tpu.memory_space<vmem>>) attributes {dimension_semantics = [#tpu.dimension_semantics<parallel>], iteration_bounds = array<i64: 1>, scalar_prefetch = 0 : i64, scratch_operands = 0 : i64, tpu.core_type = #tpu.core_type<tc>, window_params = [{transform_indices = @transform_0, window_bounds = array<i64: 128, 32>}, {transform_indices = @transform_1, window_bounds = array<i64: 128, 32>}, {pipeline_mode = #tpu.pipeline_mode<synchronous>, transform_indices = @transform_2, window_bounds = array<i64: 64, 32>}, {pipeline_mode = #tpu.pipeline_mode<synchronous>, transform_indices = @transform_3, window_bounds = array<i64: 64, 32>}, {pipeline_mode = #tpu.pipeline_mode<synchronous>, transform_indices = @transform_4, window_bounds = array<i64: 64, 1>}, {pipeline_mode = #tpu.pipeline_mode<synchronous>, transform_indices = @transform_5, window_bounds = array<i64: 64, 1>}, {transform_indices = @transform_6, window_bounds = array<i64: 1>}, {transform_indices = @transform_7, window_bounds = array<i64: 1, 128>}]} {
    %c0 = arith.constant 0 : index
    %c0_0 = arith.constant 0 : index
    %0 = vector.load %arg1[%c0, %c0_0] : memref<128x32xbf16, #tpu.memory_space<vmem>>, vector<128x32xbf16>
    %1 = arith.extf %0 : vector<128x32xbf16> to vector<128x32xf32>
    %c0_1 = arith.constant 0 : index
    %c0_2 = arith.constant 0 : index
    %2 = vector.load %arg2[%c0_1, %c0_2] : memref<128x32xbf16, #tpu.memory_space<vmem>>, vector<128x32xbf16>
    %3 = arith.extf %2 : vector<128x32xbf16> to vector<128x32xf32>
    %c0_3 = arith.constant 0 : index
    %c0_4 = arith.constant 0 : index
    %4 = vector.load %arg3[%c0_3, %c0_4] : memref<64x32xf32, #tpu.memory_space<vmem>>, vector<64x32xf32>
    %cst = arith.constant dense<0.000000e+00> : vector<64x128xf32>
    %5 = tpu.matmul %4, %1, %cst {dimension_numbers = #tpu.dot_dimension_numbers<[1], [1], [0], [0], [0, 0, 1, 0], [], []>} : vector<64x32xf32>, vector<128x32xf32>, vector<64x128xf32> -> vector<64x128xf32>
    %c0_5 = arith.constant 0 : index
    %c0_6 = arith.constant 0 : index
    %6 = vector.load %arg4[%c0_5, %c0_6] : memref<64x32xf32, #tpu.memory_space<vmem>>, vector<64x32xf32>
    %cst_7 = arith.constant dense<0.000000e+00> : vector<64x128xf32>
    %7 = tpu.matmul %6, %3, %cst_7 {dimension_numbers = #tpu.dot_dimension_numbers<[1], [1], [0], [0], [0, 0, 1, 0], [], []>} : vector<64x32xf32>, vector<128x32xf32>, vector<64x128xf32> -> vector<64x128xf32>
    %8 = arith.addf %5, %7 : vector<64x128xf32>
    %c0_8 = arith.constant 0 : index
    %c0_9 = arith.constant 0 : index
    %9 = vector.load %arg5[%c0_8, %c0_9] : memref<64x1xf32, #tpu.memory_space<vmem>>, vector<64x1xf32>
    %10 = vector.broadcast %9 : vector<64x1xf32> to vector<64x128xf32>
    %11 = arith.addf %8, %10 : vector<64x128xf32>
    %cst_10 = arith.constant 0.000000e+00 : f32
    %12 = vector.broadcast %cst_10 : f32 to vector<64x128xf32>
    %13 = arith.maximumf %11, %12 : vector<64x128xf32>
    %c0_11 = arith.constant 0 : index
    %c0_12 = arith.constant 0 : index
    %14 = vector.load %arg6[%c0_11, %c0_12] : memref<64x1xf32, #tpu.memory_space<vmem>>, vector<64x1xf32>
    %15 = vector.broadcast %14 : vector<64x1xf32> to vector<64x128xf32>
    %16 = arith.mulf %13, %15 : vector<64x128xf32>
    %cst_13 = arith.constant dense<0.000000e+00> : vector<128xf32>
    %17 = vector.multi_reduction <add>, %16, %cst_13 [0] : vector<64x128xf32> to vector<128xf32>
    %18 = vector.shape_cast %17 : vector<128xf32> to vector<1x128xf32>
    %c0_14 = arith.constant 0 : index
    %19 = memref.load %arg7[%c0_14] : memref<1xf32, #tpu.memory_space<smem>>
    %20 = vector.broadcast %19 : f32 to vector<1x128xf32>
    %21 = arith.addf %18, %20 : vector<1x128xf32>
    %c0_15 = arith.constant 0 : index
    %c0_16 = arith.constant 0 : index
    %22 = vector.load %arg8[%c0_15, %c0_16] : memref<1x128xf32, #tpu.memory_space<vmem>>, vector<1x128xf32>
    tpu.vector_store %arg8[%c0_15, %c0_16], %21 {strides = array<i32>} : memref<1x128xf32, #tpu.memory_space<vmem>>, vector<1x128xf32>,
    return
  }
  func.func @transform_0(%arg0: i32) -> (i32, i32) {
    %c0_i32 = arith.constant 0 : i32
    %c0_i32_0 = arith.constant 0 : i32
    return %arg0, %c0_i32 : i32, i32
  }
  func.func @transform_1(%arg0: i32) -> (i32, i32) {
    %c0_i32 = arith.constant 0 : i32
    %c0_i32_0 = arith.constant 0 : i32
    return %arg0, %c0_i32 : i32, i32
  }
  func.func @transform_2(%arg0: i32) -> (i32, i32) {
    %c0_i32 = arith.constant 0 : i32
    %c0_i32_0 = arith.constant 0 : i32
    %c0_i32_1 = arith.constant 0 : i32
    return %c0_i32, %c0_i32_0 : i32, i32
  }
  func.func @transform_3(%arg0: i32) -> (i32, i32) {
    %c0_i32 = arith.constant 0 : i32
    %c0_i32_0 = arith.constant 0 : i32
    %c0_i32_1 = arith.constant 0 : i32
    return %c0_i32, %c0_i32_0 : i32, i32
  }
  func.func @transform_4(%arg0: i32) -> (i32, i32) {
    %c0_i32 = arith.constant 0 : i32
    %c0_i32_0 = arith.constant 0 : i32
    %c0_i32_1 = arith.constant 0 : i32
    return %c0_i32, %c0_i32_0 : i32, i32
  }
  func.func @transform_5(%arg0: i32) -> (i32, i32) {
    %c0_i32 = arith.constant 0 : i32
    %c0_i32_0 = arith.constant 0 : i32
    %c0_i32_1 = arith.constant 0 : i32
    return %c0_i32, %c0_i32_0 : i32, i32
  }
  func.func @transform_6(%arg0: i32) -> i32 {
    %c0_i32 = arith.constant 0 : i32
    %c0_i32_0 = arith.constant 0 : i32
    return %c0_i32 : i32
  }
  func.func @transform_7(%arg0: i32) -> (i32, i32) {
    %c0_i32 = arith.constant 0 : i32
    %c0_i32_0 = arith.constant 0 : i32
    return %c0_i32, %arg0 : i32, i32
  }
}

</mosaic_0001>

<bundles_post_ra>
// kernel: view_learner_forward.1
= control target key start
LH: loop header
LB: loop body
LE: loop exit
PB: predicated region body
PF: predicated region fallthrough
CT: control target
= control target key end

     0   :  { %vm107_vm0 = vcmask 261120   ;;  %v972_v3 = vmov 0   ;;  %s1249_s1 = inlined_call_operand.vmem [shape: bf16[128,32], index: 1, kind: input, shape index: {}]   ;;  %s1250_s0 = inlined_call_operand.vmem [shape: bf16[128,32], index: 0, kind: input, shape index: {}]   ;;  %s1251_s3 = inlined_call_operand.vmem [shape: f32[64,32], index: 3, kind: input, shape index: {}]   ;;  %s1252_s2 = inlined_call_operand.vmem [shape: f32[64,32], index: 2, kind: input, shape index: {}]   ;;  %s1253_s4 = inlined_call_operand.vmem [shape: f32[64,1], index: 4, kind: input, shape index: {}]   ;;  %s1254_s5 = inlined_call_operand.vmem [shape: f32[64,1], index: 5, kind: input, shape index: {}]   ;;  %s1255_s6 = inlined_call_operand.<no memory space> [shape: f32[1], index: 6, kind: input, shape index: {}]   ;;  %s1256_s7 = inlined_call_operand.vmem [shape: f32[1,128], index: 7, kind: output, shape index: {}]  }
   0x1   :  { %v684_v0 = vld [vmem:[%s1249_s1] sm:$0xff]   ;;  %vm1018_vm1 = vmpackc.low %vm107_vm0, %vm107_vm0  ;;  %970 = vset.pattern.permute.xlu0 %v972_v3  ;;  %971 = vset.pattern.permute.xlu1 %v972_v3  ;;  %v722_v4 = vld [vmem:[%s1249_s1 + $0x8] sm:$0xff]  }
   0x2   :  { %v652_v2 = vld [vmem:[%s1250_s0] sm:$0xff]   ;;  %867 = vmatprep.subr.msk.bf16.mxu1 %vm1018_vm1, %v684_v0  ;;  %v715_v5 = vld [vmem:[%s1250_s0 + $0x8] sm:$0xff]   ;;  %v723_v8 = vld [vmem:[%s1249_s1 + $0x10] sm:$0xff]  }
   0x3   :  { %915 = vmatprep.subr.msk.bf16.mxu0 %vm1018_vm1, %v652_v2  ;;  %870 = vmatpush3.bf16.xpose.msk.msra.mxu1 %vm1018_vm1, %v684_v0  ;;  %v99_v6 = vld [vmem:[%s1251_s3] sm:$0xff]  ;;  %v716_v9 = vld [vmem:[%s1250_s0 + $0x10] sm:$0xff]   ;;  %v463_v12 = vld [vmem:[%s1253_s4 + $0x8] sm:$0xff] }
   0x4   :  { %918 = vmatpush3.bf16.xpose.msk.msra.mxu0 %vm1018_vm1, %v652_v2  ;;  %873 = vmatprep.subr.msk.bf16.mxu1 %vm1018_vm1, %v722_v4  ;;  %v91_v7 = vld [vmem:[%s1252_s2] sm:$0xff]  ;;  %v464_v11 = vld [vmem:[%s1253_s4 + $0x10] sm:$0xff]  ;;  %v465_v13 = vld [vmem:[%s1253_s4 + $0x18] sm:$0xff] }
   0x5   :  { %921 = vmatprep.subr.msk.bf16.mxu0 %vm1018_vm1, %v715_v5  ;;  %809 = vmatprep.mubr.msk.f32.mxu1 %vm107_vm0, %v99_v6  ;;  %v462_v10 = vld [vmem:[%s1253_s4] sm:$0xff]  ;;  %v724_v14 = vld [vmem:[%s1249_s1 + $0x18] sm:$0xff]   ;;  %v527_v17 = vld [vmem:[%s1254_s5 + $0x8] sm:$0xff] }
   0x6   :  { %853 = vmatprep.mubr.msk.f32.mxu0 %vm107_vm0, %v91_v7  ;;  %472 = vperm.xlu0 %970, %v462_v10   ;;  %v717_v15 = vld [vmem:[%s1250_s0 + $0x18] sm:$0xff]   ;;  %v526_v16 = vld [vmem:[%s1254_s5] sm:$0xff]  ;;  %v528_v19 = vld [vmem:[%s1254_s5 + $0x10] sm:$0xff] }
   0x7   :  { %482 = vperm.xlu1 %971, %v464_v11   ;;  %v466_v18 = vld [vmem:[%s1253_s4 + $0x20] sm:$0xff]  ;;  %v467_v22 = vld [vmem:[%s1253_s4 + $0x28] sm:$0xff]  ;;  %v529_v23 = vld [vmem:[%s1254_s5 + $0x18] sm:$0xff] }
   0x8   :  { %v725_v20 = vld [vmem:[%s1249_s1 + $0x20] sm:$0xff]   ;;  %v468_v24 = vld [vmem:[%s1253_s4 + $0x30] sm:$0xff]  ;;  %v726_v26 = vld [vmem:[%s1249_s1 + $0x28] sm:$0xff]  }
   0x9   :  { %v718_v21 = vld [vmem:[%s1250_s0 + $0x20] sm:$0xff]   ;;  %v719_v27 = vld [vmem:[%s1250_s0 + $0x28] sm:$0xff]   ;;  %v469_v28 = vld [vmem:[%s1253_s4 + $0x38] sm:$0xff] }
   0xa   :  { %477 = vperm.xlu0 %970, %v463_v12   ;;  %v530_v25 = vld [vmem:[%s1254_s5 + $0x20] sm:$0xff]  ;;  %v531_v29 = vld [vmem:[%s1254_s5 + $0x28] sm:$0xff]  ;;  %v532_v30 = vld [vmem:[%s1254_s5 + $0x30] sm:$0xff] }
   0xb   :  { %876 = vmatpush3.bf16.xpose.msk.msra.mxu1 %vm1018_vm1, %v722_v4  ;;  %487 = vperm.xlu1 %971, %v465_v13   ;;  %v533_v31 = vld [vmem:[%s1254_s5 + $0x38] sm:$0xff]  ;;  %v727_v32 = vld [vmem:[%s1249_s1 + $0x30] sm:$0xff]   ;;  %v100_v36 = vld [vmem:[%s1251_s3 + $0x8] sm:$0xff] }
   0xc   :  { %924 = vmatpush3.bf16.xpose.msk.msra.mxu0 %vm1018_vm1, %v715_v5  ;;  %879 = vmatprep.subr.msk.bf16.mxu1 %vm1018_vm1, %v723_v8  ;;  %v720_v33 = vld [vmem:[%s1250_s0 + $0x30] sm:$0xff]   ;;  %v728_v34 = vld [vmem:[%s1249_s1 + $0x38] sm:$0xff]   ;;  %v92_v37 = vld [vmem:[%s1252_s2 + $0x8] sm:$0xff] }
   0xd   :  { %927 = vmatprep.subr.msk.bf16.mxu0 %vm1018_vm1, %v716_v9  ;;  %v721_v35 = vld [vmem:[%s1250_s0 + $0x38] sm:$0xff]   ;;  %v101_v38 = vld [vmem:[%s1251_s3 + $0x10] sm:$0xff]  ;;  %v103_v42 = vld [vmem:[%s1251_s3 + $0x20] sm:$0xff] }
   0xe   :  { %536 = vperm.xlu0 %970, %v526_v16   ;;  %v93_v39 = vld [vmem:[%s1252_s2 + $0x10] sm:$0xff]  ;;  %v102_v40 = vld [vmem:[%s1251_s3 + $0x18] sm:$0xff]  ;;  %v95_v43 = vld [vmem:[%s1252_s2 + $0x20] sm:$0xff] }
   0xf   :  { %541 = vperm.xlu1 %971, %v527_v17   ;;  %v94_v41 = vld [vmem:[%s1252_s2 + $0x18] sm:$0xff]  ;;  %v104_v44 = vld [vmem:[%s1251_s3 + $0x28] sm:$0xff]  ;;  %v105_v46 = vld [vmem:[%s1251_s3 + $0x30] sm:$0xff] }
  0x10   :  { %v96_v45 = vld [vmem:[%s1252_s2 + $0x28] sm:$0xff]  ;;  %v97_v47 = vld [vmem:[%s1252_s2 + $0x30] sm:$0xff]  ;;  %v106_v48 = vld [vmem:[%s1251_s3 + $0x38] sm:$0xff] }
  0x11   :  { %v98_v49 = vld [vmem:[%s1252_s2 + $0x38] sm:$0xff] }
  0x12   :  { %492 = vperm.xlu0 %970, %v466_v18  }
  0x13   :  { %882 = vmatpush3.bf16.xpose.msk.msra.mxu1 %vm1018_vm1, %v723_v8  ;;  %546 = vperm.xlu1 %971, %v528_v19  }
  0x14   :  { %930 = vmatpush3.bf16.xpose.msk.msra.mxu0 %vm1018_vm1, %v716_v9  ;;  %885 = vmatprep.subr.msk.bf16.mxu1 %vm1018_vm1, %v724_v14 }
  0x15   :  { %933 = vmatprep.subr.msk.bf16.mxu0 %vm1018_vm1, %v717_v15 }
  0x16   :  { %497 = vperm.xlu0 %970, %v467_v22  }
  0x17   :  { %551 = vperm.xlu1 %971, %v529_v23  }
  0x1a   :  { %502 = vperm.xlu0 %970, %v468_v24  }
  0x1b   :  { %888 = vmatpush3.bf16.xpose.msk.msra.mxu1 %vm1018_vm1, %v724_v14  ;;  %556 = vperm.xlu1 %971, %v530_v25  }
  0x1c   :  { %936 = vmatpush3.bf16.xpose.msk.msra.mxu0 %vm1018_vm1, %v717_v15  ;;  %891 = vmatprep.subr.msk.bf16.mxu1 %vm1018_vm1, %v725_v20 }
  0x1d   :  { %939 = vmatprep.subr.msk.bf16.mxu0 %vm1018_vm1, %v718_v21 }
  0x1e   :  { %507 = vperm.xlu0 %970, %v469_v28  }
  0x1f   :  { %561 = vperm.xlu1 %971, %v531_v29  }
  0x22   :  { %566 = vperm.xlu0 %970, %v532_v30  }
  0x23   :  { %894 = vmatpush3.bf16.xpose.msk.msra.mxu1 %vm1018_vm1, %v725_v20  ;;  %571 = vperm.xlu1 %971, %v533_v31  }
  0x24   :  { %942 = vmatpush3.bf16.xpose.msk.msra.mxu0 %vm1018_vm1, %v718_v21  ;;  %897 = vmatprep.subr.msk.bf16.mxu1 %vm1018_vm1, %v726_v26 }
  0x25   :  { %945 = vmatprep.subr.msk.bf16.mxu0 %vm1018_vm1, %v719_v27 }
  0x2b   :  { %900 = vmatpush3.bf16.xpose.msk.msra.mxu1 %vm1018_vm1, %v726_v26 }
  0x2c   :  { %948 = vmatpush3.bf16.xpose.msk.msra.mxu0 %vm1018_vm1, %v719_v27  ;;  %903 = vmatprep.subr.msk.bf16.mxu1 %vm1018_vm1, %v727_v32 }
  0x2d   :  { %951 = vmatprep.subr.msk.bf16.mxu0 %vm1018_vm1, %v720_v33 }
  0x33   :  { %906 = vmatpush3.bf16.xpose.msk.msra.mxu1 %vm1018_vm1, %v727_v32 }
  0x34   :  { %954 = vmatpush3.bf16.xpose.msk.msra.mxu0 %vm1018_vm1, %v720_v33  ;;  %909 = vmatprep.subr.msk.bf16.mxu1 %vm1018_vm1, %v728_v34 }
  0x35   :  { %957 = vmatprep.subr.msk.bf16.mxu0 %vm1018_vm1, %v721_v35 }
  0x3b   :  { %912 = vmatpush3.bf16.xpose.msk.msra.mxu1 %vm1018_vm1, %v728_v34 }
  0x3c   :  { %960 = vmatpush3.bf16.xpose.msk.msra.mxu0 %vm1018_vm1, %v721_v35 }
  0x42   :  { %810 = vmatmul.mubr.msk.f32.vlgmr.msra.gmra.mrb[0].mxu1 %vm107_vm0, %v100_v36 }
  0x43   :  { %854 = vmatmul.mubr.msk.f32.vlgmr.msra.gmra.mrb[0].mxu0 %vm107_vm0, %v92_v37  ;;  %812 = vmatprep.mubr.msk.f32.mxu1 %vm107_vm0, %v101_v38 }
  0x44   :  { %856 = vmatprep.mubr.msk.f32.mxu0 %vm107_vm0, %v93_v39 }
  0x46   :  { %813 = vmatmul.mubr.msk.f32.gmra.mrb[2].mxu1 %vm107_vm0, %v102_v40 }
  0x47   :  { %857 = vmatmul.mubr.msk.f32.gmra.mrb[2].mxu0 %vm107_vm0, %v94_v41  ;;  %815 = vmatprep.mubr.msk.f32.mxu1 %vm107_vm0, %v103_v42 }
  0x48   :  { %859 = vmatprep.mubr.msk.f32.mxu0 %vm107_vm0, %v95_v43 }
  0x4a   :  { %816 = vmatmul.mubr.msk.f32.gmra.mrb[4].mxu1 %vm107_vm0, %v104_v44 }
  0x4b   :  { %860 = vmatmul.mubr.msk.f32.gmra.mrb[4].mxu0 %vm107_vm0, %v96_v45  ;;  %818 = vmatprep.mubr.msk.f32.mxu1 %vm107_vm0, %v105_v46 }
  0x4c   :  { %862 = vmatprep.mubr.msk.f32.mxu0 %vm107_vm0, %v97_v47 }
  0x4e   :  { %819 = vmatmul.mubr.msk.f32.gmra.mrb[6].mxu1 %vm107_vm0, %v106_v48 }
  0x4f   :  { %863 = vmatmul.mubr.msk.f32.gmra.mrb[6].mxu0 %vm107_vm0, %v98_v49 }
  0x85   :  { %v473_v50 = vpop.permute.xlu0 %472 }
  0x86   :  { %v483_v51 = vpop.permute.xlu1 %482 }
  0x89   :  { %v478_v52 = vpop.permute.xlu0 %477 }
  0x8a   :  { %v488_v53 = vpop.permute.xlu1 %487 }
  0x8d   :  { %v537_v54 = vpop.permute.xlu0 %536 }
  0x8e   :  { %v542_v55 = vpop.permute.xlu1 %541 }
  0x91   :  { %v493_v56 = vpop.permute.xlu0 %492 }
  0x92   :  { %v547_v57 = vpop.permute.xlu1 %546 }
  0x95   :  { %v498_v58 = vpop.permute.xlu0 %497 }
  0x96   :  { %v552_v59 = vpop.permute.xlu1 %551 }
  0x99   :  { %v503_v2 = vpop.permute.xlu0 %502 }
  0x9a   :  { %v557_v13 = vpop.permute.xlu1 %556 }
  0x9d   :  { %v508_v27 = vpop.permute.xlu0 %507 }
  0x9e   :  { %v562_v41 = vpop.permute.xlu1 %561 }
 0x115   :  { %v811_v60 = vpop.f32.mrb[0].mxu1 }
 0x116   :  { %v855_v61 = vpop.f32.mrb[0].mxu0  ;;  %v246_v63 = vpop.f32.mrb[1].mxu1 }
 0x117   :  { %v429_v62 = vadd.f32 %v855_v61, %v811_v60  ;;  %v423_v0 = vpop.f32.mrb[1].mxu0 }
 0x118   :  { %v424_v1 = vadd.f32 %v423_v0, %v246_v63 }
 0x119   :  { %v511_v3 = vadd.f32 %v478_v52, %v429_v62  ;;  %v814_v5 = vpop.f32.mrb[2].mxu1  ;;  %v596_v62 = vstv %s1255_s6 }
 0x11a   :  { %v510_v4 = vadd.f32 %v473_v50, %v424_v1  ;;  %v858_v6 = vpop.f32.mrb[2].mxu0  ;;  %v256_v9 = vpop.f32.mrb[3].mxu1 }
 0x11b   :  { %v519_v7 = vmax.f32 %v511_v3, 0.0  ;;  %v439_v8 = vadd.f32 %v858_v6, %v814_v5  ;;  %v433_v10 = vpop.f32.mrb[3].mxu0  ;;  %v567_v50 = vpop.permute.xlu0 %566 }
 0x11c   :  { %v518_v11 = vmax.f32 %v510_v4, 0.0  ;;  %v434_v12 = vadd.f32 %v433_v10, %v256_v9 }
 0x11d   :  { %v575_v14 = vmul.f32 %v542_v55, %v519_v7  ;;  %v513_v15 = vadd.f32 %v488_v53, %v439_v8  ;;  %v817_v18 = vpop.f32.mrb[4].mxu1  ;;  %v572_v53 = vpop.permute.xlu1 %571 }
 0x11e   :  { %v574_v16 = vmul.f32 %v537_v54, %v518_v11  ;;  %v512_v17 = vadd.f32 %v483_v51, %v434_v12  ;;  %v861_v19 = vpop.f32.mrb[4].mxu0  ;;  %v266_v22 = vpop.f32.mrb[5].mxu1 }
 0x11f   :  { %v521_v20 = vmax.f32 %v513_v15, 0.0  ;;  %v449_v21 = vadd.f32 %v861_v19, %v817_v18  ;;  %v443_v23 = vpop.f32.mrb[5].mxu0 }
 0x120   :  { %v582_v24 = vadd.f32 %v575_v14, %v574_v16  ;;  %v520_v25 = vmax.f32 %v512_v17, 0.0  ;;  %v444_v26 = vadd.f32 %v443_v23, %v266_v22 }
 0x121   :  { %v515_v28 = vadd.f32 %v498_v58, %v449_v21  ;;  %v820_v31 = vpop.f32.mrb[6].mxu1  ;;  %v577_v33 = vmul.f32 %v552_v59, %v521_v20 }
 0x122   :  { %v576_v29 = vmul.f32 %v547_v57, %v520_v25  ;;  %v514_v30 = vadd.f32 %v493_v56, %v444_v26  ;;  %v864_v32 = vpop.f32.mrb[6].mxu0  ;;  %v276_v35 = vpop.f32.mrb[7].mxu1 }
 0x123   :  { %v459_v34 = vadd.f32 %v864_v32, %v820_v31  ;;  %v453_v36 = vpop.f32.mrb[7].mxu0  ;;  %v523_v38 = vmax.f32 %v515_v28, 0.0 }
 0x124   :  { %v583_v37 = vadd.f32 %v582_v24, %v576_v29  ;;  %v522_v39 = vmax.f32 %v514_v30, 0.0  ;;  %v454_v40 = vadd.f32 %v453_v36, %v276_v35 }
 0x125   :  { %v517_v42 = vadd.f32 %v508_v27, %v459_v34  ;;  %v579_v46 = vmul.f32 %v562_v41, %v523_v38 }
 0x126   :  { %v578_v43 = vmul.f32 %v557_v13, %v522_v39  ;;  %v584_v44 = vadd.f32 %v583_v37, %v577_v33  ;;  %v516_v45 = vadd.f32 %v503_v2, %v454_v40 }
 0x127   :  { %v525_v48 = vmax.f32 %v517_v42, 0.0 }
 0x128   :  { %v585_v47 = vadd.f32 %v584_v44, %v578_v43  ;;  %v524_v49 = vmax.f32 %v516_v45, 0.0 }
 0x129   :  { %v581_v54 = vmul.f32 %v572_v53, %v525_v48 }
 0x12a   :  { %v580_v51 = vmul.f32 %v567_v50, %v524_v49  ;;  %v586_v52 = vadd.f32 %v585_v47, %v579_v46 }
 0x12c   :  { %v587_v55 = vadd.f32 %v586_v52, %v580_v51 }
 0x12e   :  { %v588_v56 = vadd.f32 %v587_v55, %v581_v54 }
 0x130   :  { %v589_v57 = vrot.slane %v588_v56, 4 }
 0x132   :  { %v590_v58 = vadd.f32 %v589_v57, %v588_v56 }
 0x134   :  { %v591_v59 = vrot.slane %v590_v58, 2 }
 0x136   :  { %v592_v60 = vadd.f32 %v591_v59, %v590_v58 }
 0x138   :  { %v593_v61 = vrot.slane %v592_v60, 1 }
 0x13a   :  { %v594_v63 = vadd.f32 %v593_v61, %v592_v60 }
 0x13c   :  { %v597_v0 = vadd.f32 %v596_v62, %v594_v63 }
 0x13e   :  { %598 = vst [vmem:[%s1256_s7] sm:$0x1] %v597_v0 }

</bundles_post_ra>
